<compile_context>
chip_gen: v6e
topology: v6e:2x2x1
jax: 0.10.0
libtpu: 0.0.40
codegen_flags: <defaults>
</compile_context>

<pallas_src>
import math

import jax
import jax.numpy as jnp
from jax import lax
from jax.experimental import pallas as pl
from jax.experimental.pallas import tpu as pltpu


# ----------------------------------------------------------------------------
# Kernel: one (batch, cout-tile, m-tile) grid step = one MXU matmul + bias.
# ----------------------------------------------------------------------------
def _conv_matmul_kernel(w_ref, p_ref, b_ref, o_ref):
    """w_ref : (TC, Kpad)   bf16 weights  (Cout tile on sublanes, taps*Cin on lanes)
       p_ref : (Kpad, TM)   bf16 im2col patches (lane-dense spatial tile)
       b_ref : (TC, 1)      f32 bias
       o_ref : (TC, TM)     output tile (channels on sublanes, spatial on lanes)
    """
    acc = jnp.dot(w_ref[...], p_ref[...], preferred_element_type=jnp.float32)
    o_ref[...] = (acc + b_ref[...]).astype(o_ref.dtype)


# ----------------------------------------------------------------------------
# Helpers
# ----------------------------------------------------------------------------
def _round_up(x, m):
    return ((x + m - 1) // m) * m


def _tpu_vmem_bytes():
    try:
        return int(pltpu.get_tpu_info().vmem_capacity_bytes)
    except Exception:
        return 64 << 20  # conservative (v7x-sized VMEM) if the query is unavailable


def _pick_tile_m(m, n_batch, col_bytes, budget_bytes):
    """Spatial (lane) tile TM: multiple of 128, double-buffered working set
    within `budget_bytes`, preferring the largest tile that still yields
    >= 8 grid steps (software pipelining / megacore balance); otherwise the
    smallest fitting tile (max steps)."""
    m128 = _round_up(m, 128)
    cands = [tm for tm in (1024, 896, 768, 640, 512, 384, 256, 128)
             if tm <= m128 and tm * col_bytes <= budget_bytes]
    if not cands:
        return 128
    for tm in cands:                       # largest first
        if n_batch * (-(-m // tm)) >= 8:
            return tm
    return cands[-1]


# ----------------------------------------------------------------------------
# Conv2d forward
# ----------------------------------------------------------------------------
def conv2d_pallas(x_nchw, weight, bias, *, stride=1, padding=None, dilation=1,
                  compute_dtype=jnp.bfloat16):
    """Conv2d forward. x_nchw: (N, Cin, H, W); weight: (Cout, Cin, KH, KW)."""
    cout, cin, kh, kw = weight.shape
    if padding is None:
        # same convention as the 1D ConvNorm in CookieTTS
        padding = int(dilation * (kh - 1) / 2)

    n, _, h, w = x_nchw.shape
    hout = (h + 2 * padding - dilation * (kh - 1) - 1) // stride + 1
    wout = (w + 2 * padding - dilation * (kw - 1) - 1) // stride + 1
    m = hout * wout
    k = cin * kh * kw

    # --- wrapper-side im2col: one fused XLA pass (pad + window walk + cast).
    # Output feature order is (Cin, KH, KW), matching weight.reshape(Cout, K).
    patches = lax.conv_general_dilated_patches(
        x_nchw.astype(compute_dtype),
        filter_shape=(kh, kw),
        window_strides=(stride, stride),
        padding=((padding, padding), (padding, padding)),
        rhs_dilation=(dilation, dilation),
        dimension_numbers=('NCHW', 'OIHW', 'NCHW'))      # (N, K, Hout, Wout)
    patches = patches.reshape(n, k, m)

    # K padded only to a sublane multiple (8), NOT to 128 lanes -> no HBM blowup.
    kpad = _round_up(k, 8)
    co_pad = _round_up(cout, 8)
    tc = co_pad if co_pad <= 256 else 256                 # Cout tile (sublanes)
    co_pad = _round_up(co_pad, tc)

    out_dtype = x_nchw.dtype

    # Generation-aware VMEM budgeting (double-buffered input & output blocks
    # + f32 MXU-result staging buffer).
    vmem_bytes = _tpu_vmem_bytes()
    small_vmem = vmem_bytes <= (96 << 20)                 # v7x-class part
    block_budget = (2 << 20) if small_vmem else (6 << 20)
    in_item = jnp.dtype(compute_dtype).itemsize
    out_item = jnp.dtype(out_dtype).itemsize
    col_bytes = (2 * kpad * in_item          # patches block, double-buffered
                 + 2 * tc * out_item         # output block, double-buffered
                 + tc * 4)                   # f32 MXU-result staging
    fixed_bytes = 2 * tc * kpad * in_item + 2 * tc * 4    # weights + bias
    tm = _pick_tile_m(m, n, col_bytes,
                      max(block_budget - fixed_bytes, 128 * col_bytes))
    mpad = _round_up(m, tm)

    patches = jnp.pad(patches, ((0, 0), (0, kpad - k), (0, mpad - m)))

    w_mat = weight.reshape(cout, k).astype(compute_dtype)
    w_mat = jnp.pad(w_mat, ((0, co_pad - cout), (0, kpad - k)))
    b_mat = jnp.pad(bias.astype(jnp.float32), (0, co_pad - cout)).reshape(co_pad, 1)

    grid = (n, co_pad // tc, mpad // tm)

    out = pl.pallas_call(
        _conv_matmul_kernel,
        out_shape=jax.ShapeDtypeStruct((n, co_pad, mpad), out_dtype),
        grid_spec=pltpu.PrefetchScalarGridSpec(
            num_scalar_prefetch=0,
            grid=grid,
            in_specs=[
                pl.BlockSpec((tc, kpad), lambda b, c, t: (c, 0)),
                pl.BlockSpec((None, kpad, tm), lambda b, c, t: (b, 0, t)),
                pl.BlockSpec((tc, 1), lambda b, c, t: (c, 0)),
            ],
            out_specs=pl.BlockSpec((None, tc, tm), lambda b, c, t: (b, c, t)),
        ),
        compiler_params=pltpu.CompilerParams(
            dimension_semantics=("parallel", "parallel", "parallel"),
            vmem_limit_bytes=(32 << 20) if small_vmem else (64 << 20)),
    )(w_mat, patches, b_mat)

    # Channels already lead (sublane axis): NCHW via slice + reshape only.
    return out[:, :cout, :m].reshape(n, cout, hout, wout)


# ----------------------------------------------------------------------------
# Module port
# ----------------------------------------------------------------------------
class ConvNorm2D:
    """JAX/Pallas port of CookieTTS ConvNorm2D (Conv2d with xavier_uniform init)."""

    def __init__(self, in_channels, out_channels, kernel_size=1, stride=1,
                 padding=None, dilation=1, bias=True, w_init_gain='linear',
                 key=jax.random.PRNGKey(0)):
        self.stride = stride
        self.padding = padding
        self.dilation = dilation
        kh = kw = kernel_size

        gain = 1.0  # calculate_gain('linear') == 1.0
        fan_in = in_channels * kh * kw
        fan_out = out_channels * kh * kw
        bound = gain * math.sqrt(6.0 / (fan_in + fan_out))
        k_w, k_b = jax.random.split(key)
        self.weight = jax.random.uniform(
            k_w, (out_channels, in_channels, kh, kw),
            minval=-bound, maxval=bound, dtype=jnp.float32)
        if bias:
            b_bound = 1.0 / math.sqrt(fan_in)
            self.bias = jax.random.uniform(
                k_b, (out_channels,), minval=-b_bound, maxval=b_bound,
                dtype=jnp.float32)
        else:
            self.bias = jnp.zeros((out_channels,), jnp.float32)

    def __call__(self, signal_nchw):
        return conv2d_pallas(signal_nchw, self.weight, self.bias,
                             stride=self.stride, padding=self.padding,
                             dilation=self.dilation)


# ----------------------------------------------------------------------------
# Self-test
# ----------------------------------------------------------------------------
if __name__ == "__main__":
    key = jax.random.PRNGKey(0)
    k_x, k_p, k_p2 = jax.random.split(key, 3)

    N, Cin, H, W = 2, 4, 16, 16
    Cout, K = 8, 3
    x = jax.random.normal(k_x, (N, Cin, H, W), dtype=jnp.float32)

    def ref_conv(x, module, stride):
        pad = module.padding
        if pad is None:
            pad = int(module.dilation * (K - 1) / 2)
        r = lax.conv_general_dilated(
            x.astype(jnp.bfloat16), module.weight.astype(jnp.bfloat16),
            window_strides=(stride, stride), padding=((pad, pad), (pad, pad)),
            rhs_dilation=(module.dilation, module.dilation),
            dimension_numbers=('NCHW', 'OIHW', 'NCHW'),
            preferred_element_type=jnp.float32)
        return r + module.bias.reshape(1, Cout, 1, 1)

    # stride = 1
    mod1 = ConvNorm2D(Cin, Cout, kernel_size=K, stride=1, padding=None,
                      dilation=1, bias=True, w_init_gain='linear', key=k_p)
    out1 = jax.block_until_ready(mod1(x))
    ref1 = ref_conv(x, mod1, 1)
    assert out1.shape == ref1.shape
    assert jnp.allclose(out1, ref1, rtol=1e-3, atol=1e-3), \
        float(jnp.max(jnp.abs(out1 - ref1)))

    # stride = 2 (functional gap from rev 2 now covered)
    mod2 = ConvNorm2D(Cin, Cout, kernel_size=K, stride=2, padding=None,
                      dilation=1, bias=True, w_init_gain='linear', key=k_p2)
    out2 = jax.block_until_ready(mod2(x))
    ref2 = ref_conv(x, mod2, 2)
    assert out2.shape == ref2.shape
    assert jnp.allclose(out2, ref2, rtol=1e-3, atol=1e-3), \
        float(jnp.max(jnp.abs(out2 - ref2)))

    print("KERNEL_OK")
</pallas_src>

<mosaic_0001>
module attributes {stable_mosaic.version = 11 : i64} {
  func.func @_conv_matmul_kernel(%arg0: i32, %arg1: i32, %arg2: i32, %arg3: memref<8x40xbf16, #tpu.memory_space<vmem>>, %arg4: memref<1x40x128xbf16, #tpu.memory_space<vmem>>, %arg5: memref<8x1xf32, #tpu.memory_space<vmem>>, %arg6: memref<1x8x128xf32, #tpu.memory_space<vmem>>) attributes {dimension_semantics = [#tpu.dimension_semantics<parallel>, #tpu.dimension_semantics<parallel>, #tpu.dimension_semantics<parallel>], iteration_bounds = array<i64: 2, 1, 2>, scalar_prefetch = 0 : i64, scratch_operands = 0 : i64, tpu.core_type = #tpu.core_type<tc>, window_params = [{transform_indices = @transform_0, window_bounds = array<i64: 8, 40>}, {transform_indices = @transform_1, window_bounds = array<i64: 1, 40, 128>}, {transform_indices = @transform_2, window_bounds = array<i64: 8, 1>}, {transform_indices = @transform_3, window_bounds = array<i64: 1, 8, 128>}]} {
    %c0 = arith.constant 0 : index
    %c0_0 = arith.constant 0 : index
    %0 = vector.load %arg3[%c0, %c0_0] : memref<8x40xbf16, #tpu.memory_space<vmem>>, vector<8x40xbf16>
    %c0_1 = arith.constant 0 : index
    %c0_2 = arith.constant 0 : index
    %c0_3 = arith.constant 0 : index
    %1 = vector.load %arg4[%c0_1, %c0_2, %c0_3] : memref<1x40x128xbf16, #tpu.memory_space<vmem>>, vector<1x40x128xbf16>
    %2 = vector.shape_cast %1 : vector<1x40x128xbf16> to vector<40x128xbf16>
    %cst = arith.constant dense<0.000000e+00> : vector<8x128xf32>
    %3 = tpu.matmul %0, %2, %cst {dimension_numbers = #tpu.dot_dimension_numbers<[1], [0], [0], [1], [0, 0, 1, 1], [], []>} : vector<8x40xbf16>, vector<40x128xbf16>, vector<8x128xf32> -> vector<8x128xf32>
    %c0_4 = arith.constant 0 : index
    %c0_5 = arith.constant 0 : index
    %4 = vector.load %arg5[%c0_4, %c0_5] : memref<8x1xf32, #tpu.memory_space<vmem>>, vector<8x1xf32>
    %5 = vector.broadcast %4 : vector<8x1xf32> to vector<8x128xf32>
    %6 = arith.addf %3, %5 : vector<8x128xf32>
    %c0_6 = arith.constant 0 : index
    %c0_7 = arith.constant 0 : index
    %c0_8 = arith.constant 0 : index
    %7 = vector.load %arg6[%c0_6, %c0_7, %c0_8] : memref<1x8x128xf32, #tpu.memory_space<vmem>>, vector<1x8x128xf32>
    %8 = vector.shape_cast %7 : vector<1x8x128xf32> to vector<8x128xf32>
    %9 = vector.shape_cast %6 : vector<8x128xf32> to vector<1x8x128xf32>
    tpu.vector_store %arg6[%c0_6, %c0_7, %c0_8], %9 {strides = array<i32>} : memref<1x8x128xf32, #tpu.memory_space<vmem>>, vector<1x8x128xf32>,
    return
  }
  func.func @transform_0(%arg0: i32, %arg1: i32, %arg2: i32) -> (i32, i32) {
    %c0_i32 = arith.constant 0 : i32
    %c0_i32_0 = arith.constant 0 : i32
    return %arg1, %c0_i32 : i32, i32
  }
  func.func @transform_1(%arg0: i32, %arg1: i32, %arg2: i32) -> (i32, i32, i32) {
    %c0_i32 = arith.constant 0 : i32
    %c0_i32_0 = arith.constant 0 : i32
    return %arg0, %c0_i32, %arg2 : i32, i32, i32
  }
  func.func @transform_2(%arg0: i32, %arg1: i32, %arg2: i32) -> (i32, i32) {
    %c0_i32 = arith.constant 0 : i32
    %c0_i32_0 = arith.constant 0 : i32
    return %arg1, %c0_i32 : i32, i32
  }
  func.func @transform_3(%arg0: i32, %arg1: i32, %arg2: i32) -> (i32, i32, i32) {
    %c0_i32 = arith.constant 0 : i32
    return %arg0, %arg1, %arg2 : i32, i32, i32
  }
}

</mosaic_0001>

<bundles_post_ra>
// kernel: tpu_custom_call.1
= control target key start
LH: loop header
LB: loop body
LE: loop exit
PB: predicated region body
PF: predicated region fallthrough
CT: control target
= control target key end

     0   :  { %8 = vsyncpa [#allocation3], 0  ;;  %s912_s0 = inlined_call_operand.vmem [shape: bf16[8,40], index: 0, kind: input, shape index: {}]   ;;  %s913_s1 = inlined_call_operand.hbm [shape: bf16[2,40,256], index: 1, kind: input, shape index: {}]   ;;  %s914_s2 = inlined_call_operand.vmem [shape: f32[8,1], index: 2, kind: input, shape index: {}]   ;;  %s915_s3 = inlined_call_operand.hbm [shape: f32[2,8,256], index: 3, kind: output, shape index: {}]  }
   0x1   :  { %10 = vsyncpa [#allocation3 + $0x1], 0 }
   0x2   :  { %11 = vsyncpa [#allocation4], 0 }
   0x3   :  { %13 = vsyncpa [#allocation4 + $0x1], 0  ;;  %s741_s12 = smov 0   ;;  %s743_s13 = smov 0  }
   0x4   :  { %s745_s14 = smov 0   ;;  %s747_s15 = smov 0  }
   0x5   :  { %s749_s16 = smov 0   ;;  %s751_s17 = smov 0  }
   0x6   :  { %s753_s18 = smov 0   ;;  %s755_s19 = smov 0  }
   0x7 LB: > { %919 = sst [smem:[#allocation8_spill]] %s707_s18  ;;  %s464_s20 = sadd.s32 4294967295, %s711_s19   ;;  %s711_s19 = sphi %s755_s19, %s19_s19   ;;  %s707_s18 = sphi %s753_s18, %s929_s18   ;;  %s703_s17 = sphi %s751_s17, %s934_s17   ;;  %s699_s16 = sphi %s749_s16, %s927_s16   ;;  %s695_s15 = sphi %s747_s15, %s933_s15   ;;  %s691_s14 = sphi %s745_s14, %s932_s14   ;;  %s687_s13 = sphi %s743_s13, %s931_s13   ;;  %s683_s12 = sphi %s741_s12, %s930_s12  }
   0x8   : > { %s465_s21 = sadd.s32 4294967294, %s711_s19   ;;  %s31_s22 = sadd.s32 1, %s703_s17 }
   0x9   : > { %s38_s23 = sadd.s32 1, %s707_s18  ;;  %p32_p0 = scmp.ge.s32.totalorder %s31_s22, 2 }
   0xa   : > { %s73_s24 = sadd.s32 1, %s691_s14  ;;  %p80_p1 = scmp.ne.s32.totalorder %s691_s14, %s687_s13 }
   0xb   : > { %p81_p2 = scmp.eq.s32.totalorder %s711_s19, 0  ;;  %s936_s22 = smov (%p32_p0, %s31_s22), 0 }
   0xc   : > { %920 = sst [smem:[#allocation9_spill]] %s936_s22  ;;  %s938_s23 = smov (!%p32_p0, %s38_s23), %s707_s18 }
   0xd   : > { %s69_s25 = ssub.s32 %s703_s17, %s936_s22  ;;  %p794_p3 = por %p81_p2, %p80_p1 }
   0xe   : > { %p40_p4 = scmp.ge.s32.totalorder %s938_s23, 2  ;;  %p86_p5 = scmp.ne.s32.totalorder %s687_s13, %s683_s12 }
   0xf   : > { %p87_p6 = scmp.eq.s32.totalorder %s464_s20, 0  ;;  %p140_p7 = scmp.eq.s32.totalorder %s464_s20, 3 }
  0x10   : > { %s940_s23 = smov (%p40_p4, %s938_s23), 0  ;;  %p146_p10 = scmp.eq.s32.totalorder %s465_s21, 3 }
  0x11   : > { %922 = sst [smem:[#allocation10_spill]] %s940_s23  ;;  %p802_p8 = por %p87_p6, %p86_p5 }
  0x12   : > { %p806_p9 = por %p140_p7, %p80_p1  ;;  %s68_s29 = ssub.s32 %s707_s18, %s940_s23 }
  0x13   : > { %s70_s30 = sor.u32 %s69_s25, %s68_s29  ;;  %p812_p12 = por %p146_p10, %p86_p5 }
  0x14   : > { %p71_p11 = scmp.eq.s32.totalorder %s70_s30, 0  ;;  %p511_p13 = scmp.lt.s32.totalorder %s711_s19, 4 }
  0x15   : > { %s180_s5 = sand.u32 1, %s691_s14   ;;  %s497_s8 = smul.u32 10, %s707_s18 }
  0x16   : > { %s819_s6 = scalar_select %p71_p11, %s691_s14, %s73_s24  }
  0x17   : > { %s496_s7 = smul.u32 20, %s180_s5  ;;  %p824_p0 = pnand %p511_p13, %p794_p3 }
  0x18   : > { %s189_s10 = sadd.s32 %s703_s17, %s497_s8  ;;  %s181_s23 = scalar_lea.sflag [#allocation3], %s180_s5 }
  0x19   : > { %s184_s11 = scalar_lea.vmem [#allocation2], %s496_s7  ;;  %s470_s21 = sshll.u32 %s189_s10, 6 }
  0x1a   : > { %s192_s20 = sshll.u32 %s184_s11, 4  ;;  %s191_s30 = scalar_lea.hbm %s913_s1, %s470_s21  ;;  %s193_s20 = int_to_ptr.vmem [resolvable:$true] %s192_s20 }
  0x1b   : > { %p589_p1 = pneg %p824_p0  ;;  %s600_s24 = scalar_lea.vmem %s193_s20, 320 }
  0x1c   : > { %p601_p2 = scmp.ne.s32.totalorder %s193_s20, %s600_s24  ;;  %s713_s26 = smov [#allocation2]  }
  0x1d   : > { %s605_s22 = sshll.u32 %s713_s26, 4  ;;  %s606_s22 = int_to_ptr.vmem [resolvable:$false] %s605_s22 }
  0x1e   : > { %p603_p4 = pnand %p601_p2, %p589_p1  ;;  %s607_s18 = scalar_lea.vmem %s606_s22, 640 }
  0x1f   : > { %p608_p5 = scmp.lt.s32.totalorder %s193_s20, %s606_s22  ;;  %p609_p6 = scmp.lt.s32.totalorder %s607_s18, %s600_s24 }
  0x20   : > { %p604_p3 = pneg %p603_p4 }
  0x21   : > { %p610_p7 = por %p609_p6, %p608_p5 }
  0x23   : > { %p611_p10 = pnand %p610_p7, %p604_p3 }
  0x25   : > { %614 = shalt.err (!%p611_p10)
}
  0x26   : > { %s714_s7 = smov 128   ;;  %s715_s5 = smov 64  }
  0x27   : > { %s716_s8 = smov 4   ;;  %p471_p11 = scmp.ge.s32.totalorder %s711_s19, 1 }
  0x28   : > { %506 = dma.hbm_to_vmem [thread:$0]  (!%p824_p0), %s191_s30, 320, %s193_s20, %s181_s23, %s714_s7, %s715_s5, %s716_s8  }
  0x29   : > { %p200_p13 = scmp.lt.s32.totalorder %s711_s19, 5 }
  0x2b   : > { %p201_p1 = pnand %p471_p11, %p200_p13 }
  0x2c   : > { %s839_s10 = sand.u32 (!%p201_p1), 1, %s687_s13  }
  0x2d   : > { %204 = sbr.rel (%p201_p1) target bundleno = 274 (0x112), region = 32  ;;  %s207_s22 = scalar_lea.sflag (!%p201_p1), [#allocation3], %s839_s10 }
  0x2e   : > { %s498_s18 = smul.u32 (!%p201_p1), 20, %s839_s10 }
  0x30   : > { %s210_s11 = scalar_lea.vmem (!%p201_p1), [#allocation2], %s498_s18 }
  0x32   : > { %674 = dma.done.wait (%p802_p8), %s207_s22, 320  }
  0x33   : > { %676 = vsyncadd (%p802_p8), %s207_s22, 4294966976  ;;  %v717_v0 = vmov 0.0   ;;  %vm718_vm0 = vmmov 0   ;;  %v719_v1 = vmov 0   ;;  %vm281_vm1 = vcmask 1043456   ;;  %v585_v4 = vld [vmem:[%s210_s11 + $0x8] sm:$0xff]  }
  0x34   : > { %486 = vmatprep.subr.bf16.mxu0 %v717_v0  ;;  %492 = vmatprep.mubr.msk.bf16.mxu0 %vm718_vm0, %v717_v0  ;;  %v584_v2 = vld [vmem:[%s210_s11 + $0x10] ss:$0 sps:$4 sm:$0xff]   ;;  %v586_v6 = vld [vmem:[%s210_s11] sm:$0xff]   ;;  %vm277_vm2 = vcmask 326656   ;;  %s472_s21 = sshll.u32 %s839_s10, 3  ;;  %s478_s25 = sshll.u32 %s699_s16, 1 }
  0x35   : > { %583 = vset.pattern.permute.xlu0 %v719_v1  ;;  %v283_v3 = vsel %vm281_vm1, %v584_v2, 0  ;;  %v256_v5 = vld [vmem:[%s914_s2] sm:$0xff]  ;;  %s340_s29 = sadd.s32 %s695_s15, %s478_s25  ;;  %s240_s24 = scalar_lea.vmem [#allocation5], %s472_s21 }
  0x36   : > { %487 = vmatpush3.bf16.msra.mxu0 %v283_v3  ;;  %259 = vperm.xlu0 %583, %v256_v5   ;;  %v250_v7 = vld [vmem:[%s912_s0] sm:$0xf]  ;;  %s479_s30 = sshll.u32 %s340_s29, 7  ;;  %s344_s26 = sshll.u32 %s240_s24, 4  ;;  %s861_s26 = int_to_ptr.vmem [resolvable:$true] %s344_s26 }
  0x37   : > { %488 = vmatprep.subr.bf16.mxu0 %v717_v0  ;;  %s859_s8 = scalar_lea.hbm %s915_s3, %s479_s30  ;;  %s327_s15 = scalar_lea.sflag [#allocation4], %s839_s10 }
  0x38   : > { %s615_s16 = scalar_lea.vmem %s861_s26, 128  ;;  %s720_s18 = smov [#allocation5]  }
  0x39   : > { %p616_p8 = scmp.ne.s32.totalorder %s861_s26, %s615_s16  ;;  %s619_s22 = sshll.u32 %s720_s18, 4  ;;  %s620_s22 = int_to_ptr.vmem [resolvable:$false] %s619_s22 }
  0x3a   : > { %489 = vmatpush3.bf16.msra.mxu0 %v585_v4  ;;  %s621_s11 = scalar_lea.vmem %s620_s22, 256  ;;  %p622_p4 = scmp.lt.s32.totalorder %s861_s26, %s620_s22 }
  0x3b   : > { %490 = vmatprep.subr.bf16.mxu0 %v717_v0  ;;  %p617_p0 = pnand %p616_p8, %p806_p9  ;;  %p623_p3 = scmp.lt.s32.totalorder %s621_s11, %s615_s16 }
  0x3d   : > { %p618_p2 = pneg %p617_p0  ;;  %p624_p5 = por %p623_p3, %p622_p4 }
  0x3e   : > { %491 = vmatpush3.bf16.msra.mxu0 %v586_v6 }
  0x3f   : > { %p625_p6 = pnand %p624_p5, %p618_p2 }
  0x41   : > { %493 = vmatmul.mubr.msk.bf16.vlgmr.msra.gmra.mxu0 %vm277_vm2, %v250_v7 }
  0xb1   : > { %v260_v8 = vpop.permute.xlu0 %259 }
 0x101   : > { %v319_v9 = vpop.f32.mrf.mxu0 }
 0x102   : > { %v320_v10 = vadd.f32 %v319_v9, %v260_v8 }
 0x103   : > { %v494_v11 = vpop.f32.mrf.mxu0 }
 0x104   : > { %325 = vst [vmem:[%s240_s24] sm:$0xff] %v320_v10 }
 0x105   : > { %v322_v12 = vpop.f32.mrf.mxu0 }
 0x106   : > { %628 = shalt.err (!%p625_p6)
}
 0x107   : > { %s629_s23 = scalar_lea.hbm %s859_s8, 128  ;;  %s633_s27 = scalar_lea.hbm %s915_s3, 512 }
 0x108   : > { %p630_p7 = scmp.ne.s32.totalorder %s859_s8, %s629_s23  ;;  %p634_p13 = scmp.lt.s32.totalorder %s859_s8, %s915_s3 }
 0x109   : > { %p635_p1 = scmp.lt.s32.totalorder %s633_s27, %s629_s23 }
 0x10a   : > { %p631_p10 = pnand %p630_p7, %p806_p9 }
 0x10b   : > { %p636_p8 = por %p635_p1, %p634_p13 }
 0x10c   : > { %p632_p11 = pneg %p631_p10 }
 0x10e   : > { %p637_p0 = pnand %p636_p8, %p632_p11 }
 0x110   : > { %640 = shalt.err (!%p637_p0)
}
 0x111   : > { %501 = dma.vmem_to_hbm [thread:$0]  (%p806_p9), %s861_s26, 128, %s859_s8, %s327_s15   ;;  %v495_v13 = vpop.f32.mrf.mxu0 }
 0x112 PF: > { %p512_p2 = scmp.ge.s32.totalorder %s711_s19, 2  ;;  %s356_s25 = sand.u32 1, %s683_s12  }
 0x113   : > { %s357_s29 = scalar_lea.sflag [#allocation4], %s356_s25 }
 0x114   : > { %p508_p4 = pnand %p512_p2, %p812_p12 }
 0x116   : > { %p509_p3 = pneg %p508_p4 }
 0x118   : > { %678 = dma.done.wait (%p509_p3), %s357_s29, 128  }
 0x119   : > { %680 = vsyncadd (%p509_p3), %s357_s29, 4294967168  ;;  %s19_s19 = sadd.s32 1, %s711_s19   ;;  %s927_s16 = sld [smem:[#allocation8_spill]] }
 0x11a   : > { %p16_p5 = scmp.ge.s32.totalorder %s19_s19, 6   ;;  %s928_s28 = sld [smem:[#allocation9_spill]] }
 0x11b   : > { %s929_s18 = sld [smem:[#allocation10_spill]]  ;;  %s930_s12 = smov %s687_s13 }
 0x11c   : > { %s931_s13 = smov %s691_s14  ;;  %s932_s14 = smov %s819_s6 }
 0x11d   : > { %s933_s15 = smov %s703_s17  ;;  %18 = sbr.rel (!%p16_p5) target bundleno = 7 (0x7), region = 83 }
 0x120   : > { %s934_s17 = smov %s928_s28 }
 0x122   :  { %362 = vsyncpa [#allocation3], 1 }
 0x123   :  { %364 = vsyncpa [#allocation3 + $0x1], 1 }
 0x124   :  { %365 = vsyncpa [#allocation4], 1 }
 0x125   :  { %367 = vsyncpa [#allocation4 + $0x1], 1 }

</bundles_post_ra>
